<compile_context>
chip_gen: v7x
topology: tpu7x:2x2x1
jax: 0.10.0
libtpu: 0.0.40
codegen_flags: <defaults>
</compile_context>

<pallas_src>
import numpy as np

import jax
import jax.numpy as jnp
from jax import lax
from jax.experimental import pallas as pl
from jax.experimental.pallas import tpu as pltpu


def _round_up(x, m):
    return (x + m - 1) // m * m


def _sublane_multiple(dtype):
    # Minimum second-to-last tile granularity by element width:
    # f32 -> 8, bf16/f16 -> 16, int8/fp8 -> 32.
    return {4: 8, 2: 16, 1: 32}.get(jnp.dtype(dtype).itemsize, 8)


# ---------------------------------------------------------------------------
# Fast path: table resident in VMEM, gather via one-hot MXU matmul.
# ---------------------------------------------------------------------------
def _embed_onehot_kernel(ids_ref, emb_ref, out_ref):
    # ids_ref : VMEM int32 [tile, 1]   token ids for this tile
    # emb_ref : VMEM       [V, D]      full table, resident across the grid
    # out_ref : VMEM       [tile, D]
    tile = out_ref.shape[0]
    vocab = emb_ref.shape[0]
    ids = ids_ref[...]                                         # (tile, 1)
    cols = lax.broadcasted_iota(jnp.int32, (tile, vocab), 1)   # (tile, V)
    onehot = (cols == ids).astype(emb_ref.dtype)
    # TODO(synk): for D < 128 a lane-dense output layout would avoid masked
    # partial stores; left as-is since real embedders use D >= 128.
    out_ref[...] = jnp.dot(
        onehot, emb_ref[...], preferred_element_type=jnp.float32
    ).astype(out_ref.dtype)


# ---------------------------------------------------------------------------
# Gather path: table stays in HBM, one row DMA per token into the out block.
# ---------------------------------------------------------------------------
def _embed_gather_kernel(ids_ref, emb_hbm, out_ref, sem):
    # ids_ref : SMEM int32 [N_pad]     flattened token ids (scalar prefetch)
    # emb_hbm : HBM        [V, D]      embedding table (never fully in VMEM)
    # out_ref : VMEM       [tile, D]   pipelined output block; DMAs land here
    # sem     : one DMA semaphore shared by all row copies of this step
    tile = out_ref.shape[0]
    base = pl.program_id(0) * tile

    def issue(t, carry):
        row = ids_ref[base + t]
        # Row gather straight into the output block (no landing buffer).
        pltpu.make_async_copy(emb_hbm.at[row], out_ref.at[t], sem).start()
        return carry

    # Unrolled issue loop: keeps the DMA-descriptor (vector-misc) slot fed.
    lax.fori_loop(0, tile, issue, 0, unroll=8)

    # Single wait sized to the whole tile: the semaphore counts bytes and the
    # copies above total exactly tile * D * itemsize bytes.
    pltpu.make_async_copy(emb_hbm.at[pl.ds(0, tile)], out_ref, sem).wait()


def embedder_forward(x, emb_table, *, token_tile=256, use_vmem_table=None):
    """Pallas equivalent of Embedder.forward: emb_table[x].

    x         : integer array [...]   token ids (any leading shape)
    emb_table : [V, D]                 embedding table (nn.Embedding.weight)
    returns   : [..., D]
    """
    V, D = emb_table.shape
    dtype = emb_table.dtype
    elem = jnp.dtype(dtype).itemsize
    lead_shape = x.shape
    N = int(np.prod(lead_shape)) if lead_shape else 1
    sub = _sublane_multiple(dtype)

    if use_vmem_table is None:
        # Small/medium vocab: resident-table one-hot path (MXU), no per-row DMA.
        use_vmem_table = (V <= 1024) and (V * D * elem <= 4 * 1024 * 1024)
    if V < sub:
        use_vmem_table = True  # tiny vocab always fits; avoids degenerate tiles

    # --- token tile (second-to-last dim of the output block) ---------------
    tile = max(sub, (min(token_tile, _round_up(N, sub)) // sub) * sub)
    # Cap so the two pipelined output buffers stay well under the default
    # scoped-VMEM budget on every generation (v7x 64 MiB physical is tightest).
    cap = (8 * 1024 * 1024) // (2 * D * elem)
    cap = max(sub, (cap // sub) * sub)
    tile = min(tile, cap)
    if not use_vmem_table:
        # Keep tile <= V so the tile-sized wait descriptor can slice the table.
        tile = min(tile, max(sub, (V // sub) * sub))
    n_pad = _round_up(N, tile)
    if n_pad // tile == 1 and tile % (2 * sub) == 0:
        tile //= 2  # >= 2 grid steps keeps both v7x TensorCores busy
    grid = (n_pad // tile,)

    ids = x.reshape(N).astype(jnp.int32)
    if n_pad != N:
        ids = jnp.pad(ids, (0, n_pad - N))  # padded slots gather row 0, dropped

    if use_vmem_table:
        cost = pl.CostEstimate(
            flops=2 * n_pad * V * D,
            transcendentals=0,
            bytes_accessed=int(V * D * elem + n_pad * (4 + D * elem)),
        )
        out_flat = pl.pallas_call(
            _embed_onehot_kernel,
            out_shape=jax.ShapeDtypeStruct((n_pad, D), dtype),
            grid=grid,
            in_specs=[
                pl.BlockSpec((tile, 1), lambda i: (i, 0)),     # ids per tile
                pl.BlockSpec((V, D), lambda i: (0, 0)),        # resident table
            ],
            out_specs=pl.BlockSpec((tile, D), lambda i: (i, 0)),
            compiler_params=pltpu.CompilerParams(
                dimension_semantics=("parallel",)),
            cost_estimate=cost,
        )(ids.reshape(n_pad, 1), emb_table)
    else:
        cost = pl.CostEstimate(
            flops=0,
            transcendentals=0,
            bytes_accessed=int(2 * n_pad * D * elem + n_pad * 4),
        )
        out_flat = pl.pallas_call(
            _embed_gather_kernel,
            out_shape=jax.ShapeDtypeStruct((n_pad, D), dtype),
            grid_spec=pltpu.PrefetchScalarGridSpec(
                num_scalar_prefetch=1,                      # ids -> SMEM
                grid=grid,
                in_specs=[
                    pl.BlockSpec(memory_space=pl.ANY),      # table stays in HBM
                ],
                out_specs=pl.BlockSpec((tile, D), lambda i, ids: (i, 0)),
                scratch_shapes=[
                    pltpu.SemaphoreType.DMA,                # shared DMA sem
                ],
            ),
            compiler_params=pltpu.CompilerParams(
                dimension_semantics=("parallel",)),
            cost_estimate=cost,
        )(ids, emb_table)

    return out_flat[:N].reshape(*lead_shape, D)


if __name__ == "__main__":
    # Small shapes consistent with the module's forward:
    #   vocab_size = 64, embedding_dim = 32, batch = 2, seq = 8.
    # (Per the perf review, this table size should — and does — take the
    #  VMEM-resident fast path; the HBM gather path is reserved for large V.)
    vocab_size = 64
    embedding_dim = 32
    batch, seq = 2, 8

    key = jax.random.PRNGKey(0)
    k_emb, k_ids = jax.random.split(key)

    # Deterministic parameter init (nn.Embedding default: N(0, 1)).
    emb_table = jax.random.normal(
        k_emb, (vocab_size, embedding_dim), dtype=jnp.float32
    )
    # Deterministic example input token ids.
    x = jax.random.randint(k_ids, (batch, seq), 0, vocab_size, dtype=jnp.int32)

    out = embedder_forward(x, emb_table)
    out = jax.block_until_ready(out)

    # Reference check against a plain JAX gather (same semantics as torch).
    ref = jnp.take(emb_table, x, axis=0)
    assert out.shape == (batch, seq, embedding_dim)
    np.testing.assert_allclose(np.asarray(out), np.asarray(ref),
                               rtol=1e-6, atol=1e-6)

    print("KERNEL_OK")
</pallas_src>

<mosaic_0001>
module attributes {stable_mosaic.version = 11 : i64} {
  func.func @_embed_onehot_kernel(%arg0: i32, %arg1: memref<8x1xi32, #tpu.memory_space<vmem>>, %arg2: memref<64x32xf32, #tpu.memory_space<vmem>>, %arg3: memref<8x32xf32, #tpu.memory_space<vmem>>) attributes {dimension_semantics = [#tpu.dimension_semantics<parallel>], iteration_bounds = array<i64: 2>, scalar_prefetch = 0 : i64, scratch_operands = 0 : i64, tpu.core_type = #tpu.core_type<tc>, window_params = [{transform_indices = @transform_0, window_bounds = array<i64: 8, 1>}, {pipeline_mode = #tpu.pipeline_mode<synchronous>, transform_indices = @transform_1, window_bounds = array<i64: 64, 32>}, {transform_indices = @transform_2, window_bounds = array<i64: 8, 32>}]} {
    %c0 = arith.constant 0 : index
    %c0_0 = arith.constant 0 : index
    %0 = vector.load %arg1[%c0, %c0_0] : memref<8x1xi32, #tpu.memory_space<vmem>>, vector<8x1xi32>
    %1 = tpu.iota {dimensions = array<i32: 1>} : vector<8x64xi32>
    %2 = vector.broadcast %0 : vector<8x1xi32> to vector<8x64xi32>
    %3 = arith.cmpi eq, %1, %2 : vector<8x64xi32>
    %4 = arith.extui %3 : vector<8x64xi1> to vector<8x64xi32>
    %5 = arith.sitofp %4 : vector<8x64xi32> to vector<8x64xf32>
    %c0_1 = arith.constant 0 : index
    %c0_2 = arith.constant 0 : index
    %6 = vector.load %arg2[%c0_1, %c0_2] : memref<64x32xf32, #tpu.memory_space<vmem>>, vector<64x32xf32>
    %cst = arith.constant dense<0.000000e+00> : vector<8x32xf32>
    %7 = tpu.matmul %5, %6, %cst {dimension_numbers = #tpu.dot_dimension_numbers<[1], [0], [0], [1], [0, 0, 1, 1], [], []>} : vector<8x64xf32>, vector<64x32xf32>, vector<8x32xf32> -> vector<8x32xf32>
    %c0_3 = arith.constant 0 : index
    %c0_4 = arith.constant 0 : index
    %8 = vector.load %arg3[%c0_3, %c0_4] : memref<8x32xf32, #tpu.memory_space<vmem>>, vector<8x32xf32>
    tpu.vector_store %arg3[%c0_3, %c0_4], %7 {strides = array<i32>} : memref<8x32xf32, #tpu.memory_space<vmem>>, vector<8x32xf32>,
    return
  }
  func.func @transform_0(%arg0: i32) -> (i32, i32) {
    %c0_i32 = arith.constant 0 : i32
    %c0_i32_0 = arith.constant 0 : i32
    return %arg0, %c0_i32 : i32, i32
  }
  func.func @transform_1(%arg0: i32) -> (i32, i32) {
    %c0_i32 = arith.constant 0 : i32
    %c0_i32_0 = arith.constant 0 : i32
    %c0_i32_1 = arith.constant 0 : i32
    return %c0_i32, %c0_i32_0 : i32, i32
  }
  func.func @transform_2(%arg0: i32) -> (i32, i32) {
    %c0_i32 = arith.constant 0 : i32
    %c0_i32_0 = arith.constant 0 : i32
    return %arg0, %c0_i32 : i32, i32
  }
}

</mosaic_0001>

<bundles_post_ra>
// kernel: tpu_custom_call.1
= control target key start
LH: loop header
LB: loop body
LE: loop exit
PB: predicated region body
PF: predicated region fallthrough
CT: control target
= control target key end

     0   :  { %7 = vsyncpa [#allocation3], 0  ;;  %s609_s0 = inlined_call_operand.vmem [shape: s32[16,1], index: 0, kind: input, shape index: {}]   ;;  %s610_s1 = inlined_call_operand.vmem [shape: f32[64,32], index: 1, kind: input, shape index: {}]   ;;  %s611_s2 = inlined_call_operand.hbm [shape: f32[16,32], index: 2, kind: output, shape index: {}]  }
   0x1   :  { %9 = vsyncpa [#allocation3 + $0x1], 0  ;;  %s485_s9 = smov 0   ;;  %s487_s10 = smov 0  }
   0x2   :  { %s489_s11 = smov 0   ;;  %s491_s12 = smov 0  }
   0x3 LB: > { %s506_s13 = sadd.s32 4294967295, %s463_s12   ;;  %s305_s14 = sadd.s32 4294967294, %s463_s12   ;;  %s463_s12 = sphi %s491_s12, %s617_s12   ;;  %s459_s11 = sphi %s489_s11, %s616_s11   ;;  %s455_s10 = sphi %s487_s10, %s615_s10   ;;  %s451_s9 = sphi %s485_s9, %s614_s9  }
   0x4   : > { %s510_s15 = sadd.s32 1, %s463_s12   ;;  %s69_s16 = sadd.s32 1, %s459_s11 }
   0x5   : > { %s66_s17 = ssub.s32 %s463_s12, %s510_s15  ;;  %p79_p0 = scmp.ne.s32.totalorder %s459_s11, %s455_s10 }
   0x6   : > { %p67_p1 = scmp.eq.s32.totalorder %s66_s17, 0  ;;  %p80_p2 = scmp.eq.s32.totalorder %s506_s13, 1 }
   0x7   : > { %p85_p3 = scmp.ne.s32.totalorder %s455_s10, %s451_s9  ;;  %p86_p4 = scmp.eq.s32.totalorder %s305_s14, 1 }
   0x8   : > { %s521_s18 = scalar_select %p67_p1, %s459_s11, %s69_s16  }
   0x9   : > { %p523_p5 = por %p80_p2, %p79_p0  ;;  %p527_p6 = por %p86_p4, %p85_p3 }
   0xa   : > { %p308_p7 = scmp.ge.s32.totalorder %s463_s12, 1  ;;  %p114_p8 = scmp.lt.s32.totalorder %s463_s12, 3 }
   0xc   : > { %p115_p9 = pnand %p308_p7, %p114_p8 }
   0xd   : > { %p135_p10 = scmp.lt.s32.totalorder (!%p115_p9), %s506_s13, 1  ;;  %v148_v0 = vld [vmem:[%s610_s1] sm:$0xff] (!%p115_p9)  ;;  %v149_v1 = vld [vmem:[%s610_s1 + $0x8] sm:$0xff] (!%p115_p9)  ;;  %v150_v2 = vld [vmem:[%s610_s1 + $0x10] sm:$0xff] (!%p115_p9)  ;;  %v465_v3 = vmov (!%p115_p9), 0   ;;  %v466_v4 = vmov (!%p115_p9), 0.0|0.0   ;;  %v140_v16 = vlaneseq (!%p115_p9) }
   0xe   : > { %118 = sbr.rel (%p115_p9) target bundleno = 382 (0x17e), region = 28  ;;  %400 = vset.pattern.permute.xlu0 (!%p115_p9), %v465_v3  ;;  %345 = vmatprep.subr.bf16.mxu0 (!%p115_p9), %v466_v4  ;;  %v346_v5 = vpack.c.bf16 (!%p115_p9), %v149_v1, %v148_v0  ;;  %v151_v6 = vld [vmem:[%s610_s1 + $0x18] sm:$0xff] (!%p115_p9)  ;;  %v152_v8 = vld [vmem:[%s610_s1 + $0x20] sm:$0xff] (!%p115_p9)  ;;  %v153_v9 = vld [vmem:[%s610_s1 + $0x28] sm:$0xff] (!%p115_p9)  ;;  %vm467_vm0 = vmmov (!%p115_p9), 0   ;;  %v468_v14 = vmov (!%p115_p9), 0.0  }
   0xf   : > { %v349_v7 = vpack.c.bf16 (!%p115_p9), %v151_v6, %v150_v2  ;;  %v352_v11 = vpack.c.bf16 (!%p115_p9), %v153_v9, %v152_v8  ;;  %v154_v12 = vld [vmem:[%s610_s1 + $0x30] sm:$0xff] (!%p115_p9)  ;;  %v155_v13 = vld [vmem:[%s610_s1 + $0x38] sm:$0xff] (!%p115_p9)  ;;  %342 = vmatprep.mubr.msk.f32.mxu0 (!%p115_p9), %vm467_vm0, %v468_v14  ;;  %v141_v17 = vand.u32 (!%p115_p9), 127, %v140_v16  ;;  %vm156_vm1 = vcmask (!%p115_p9), 523264   ;;  %s132_s23 = sand.u32 (!%p115_p9), 1, %s455_s10   ;;  %s314_s25 = sshll.u32 (!%p115_p9), %s506_s13, 7 }
  0x10   : > { %347 = vmatpush3.bf16.msra.mxu0 (!%p115_p9), %v346_v5  ;;  %v355_v15 = vpack.c.bf16 (!%p115_p9), %v155_v13, %v154_v12  ;;  %s309_s24 = sshll.u32 (!%p115_p9), %s132_s23, 3  ;;  %vm230_vm3 = vcmask (!%p115_p9), 261120   ;;  %s233_s3 = scalar_lea.sflag (!%p115_p9), [#allocation3], %s132_s23 }
  0x11   : > { %348 = vmatprep.subr.bf16.mxu0 (!%p115_p9), %v466_v4  ;;  %s134_s26 = scalar_lea.vmem (!%p115_p9), [#allocation2], %s309_s24 }
  0x12   : > { %s246_s27 = sshll.u32 (!%p115_p9), %s134_s26, 4  ;;  %s569_s27 = int_to_ptr.vmem [resolvable:$true] %s246_s27 }
  0x13   : > { %s401_s4 = scalar_lea.vmem (!%p115_p9), %s569_s27, 128 }
  0x14   : > { %350 = vmatpush3.bf16.msra.mxu0 (!%p115_p9), %v349_v7  ;;  %p402_p11 = scmp.ne.s32.totalorder (!%p115_p9), %s569_s27, %s401_s4 }
  0x15   : > { %s136_s29 = scalar_select %p135_p10, %s506_s13, 1  ;;  %351 = vmatprep.subr.bf16.mxu0 %v466_v4 }
  0x16   : > { %p403_p12 = pnand %p402_p11, %p523_p5  ;;  %s469_s13 = smov [#allocation2]  }
  0x17   : > { %s310_s30 = sshll.u32 %s136_s29, 3  ;;  %s405_s5 = sshll.u32 %s469_s13, 4  ;;  %s406_s5 = int_to_ptr.vmem [resolvable:$false] %s405_s5 }
  0x18   : > { %s138_s14 = scalar_lea.vmem %s609_s0, %s310_s30  ;;  %353 = vmatpush3.bf16.msra.mxu0 %v352_v11  ;;  %s567_s30 = scalar_lea.hbm %s611_s2, %s314_s25 }
  0x19   : > { %v139_v10 = vld [vmem:[%s138_s14] sm:$0xff]  ;;  %354 = vmatprep.subr.bf16.mxu0 %v466_v4  ;;  %p404_p13 = pneg %p403_p12  ;;  %s407_s6 = scalar_lea.vmem %s406_s5, 256 }
  0x1a   : > { %143 = vperm.xlu0 %400, %v139_v10   ;;  %p408_p0 = scmp.lt.s32.totalorder %s569_s27, %s406_s5  ;;  %p409_p1 = scmp.lt.s32.totalorder %s407_s6, %s401_s4 }
  0x1c   : > { %356 = vmatpush3.bf16.msra.mxu0 %v355_v15  ;;  %p410_p2 = por %p409_p1, %p408_p0 }
  0x1e   : > { %p411_p3 = pnand %p410_p2, %p404_p13 }
  0x99   : > { %v144_v18 = vpop.permute.xlu0 %143 }
  0x9a   : > { %vm145_vm2 = vcmp.eq.s32.totalorder %v141_v17, %v144_v18 }
  0x9b   : > { %v311_v19 = vsel %vm145_vm2, 1.0, %v468_v14 }
  0x9c   : > { %343 = vmatmul.mubr.msk.f32.vlgmr.msra.gmra.mrb[0].mxu0 %vm156_vm1, %v311_v19 }
 0x16f   : > { %v226_v20 = vpop.f32.mrb[0].mxu0 }
 0x170   : > { %231 = vst.msk [vmem:[%s134_s26] sm:$0xff] %vm230_vm3, %v226_v20  ;;  %v344_v21 = vpop.f32.mrb[1].mxu0 }
 0x171   : > { %414 = shalt.err (!%p411_p3)
}
 0x172   : > { %s415_s7 = scalar_lea.hbm %s567_s30, 128  ;;  %s419_s16 = scalar_lea.hbm %s611_s2, 256 }
 0x173   : > { %p416_p4 = scmp.ne.s32.totalorder %s567_s30, %s415_s7  ;;  %p420_p9 = scmp.lt.u32.totalorder %s567_s30, %s611_s2 }
 0x174   : > { %p421_p10 = scmp.lt.u32.totalorder %s419_s16, %s415_s7  ;;  %p423_p12 = scmp.lt.u32.totalorder %s415_s7, %s567_s30 }
 0x175   : > { %p417_p7 = pnand %p416_p4, %p523_p5 }
 0x176   : > { %p422_p11 = por %p421_p10, %p420_p9 }
 0x177   : > { %p418_p8 = pneg %p417_p7 }
 0x178   : > { %p424_p13 = por %p423_p12, %p422_p11 }
 0x17a   : > { %p425_p0 = pnand %p424_p13, %p418_p8 }
 0x17c   : > { %428 = shalt.err (!%p425_p0)
}
 0x17d   : > { %357 = dma.vmem_to_hbm [thread:$0]  (%p523_p5), %s569_s27, 128, %s567_s30, %s233_s3  }
 0x17e PF: > { %p363_p1 = scmp.ge.s32.totalorder %s463_s12, 2  ;;  %s258_s22 = sand.u32 1, %s451_s9  }
 0x17f   : > { %s259_s23 = scalar_lea.sflag [#allocation3], %s258_s22 }
 0x180   : > { %p360_p2 = pnand %p363_p1, %p527_p6 }
 0x182   : > { %446 = dma.done.wait (!%p360_p2), %s259_s23, 128  }
 0x183   : > { %448 = vsyncadd (!%p360_p2), %s259_s23, 4294967168  ;;  %p12_p3 = scmp.ge.s32.totalorder %s510_s15, 4   ;;  %s614_s9 = smov %s455_s10 }
 0x184   : > { %s615_s10 = smov %s459_s11  ;;  %s616_s11 = smov %s521_s18 }
 0x185   : > { %s617_s12 = smov %s510_s15  ;;  %14 = sbr.rel (!%p12_p3) target bundleno = 3 (0x3), region = 63 }
 0x18c   :  { %264 = vsyncpa [#allocation3], 1 }
 0x18d   :  { %266 = vsyncpa [#allocation3 + $0x1], 1 }

</bundles_post_ra>
